<compile_context>
chip_gen: v5e
topology: v5e:2x2
jax: 0.10.0
libtpu: 0.0.40
codegen_flags: <defaults>
</compile_context>

<pallas_src>
import math

import jax
import jax.numpy as jnp
from jax import lax
from jax.experimental import pallas as pl
from jax.experimental.pallas import tpu as pltpu


# ----------------------------- model dims -----------------------------------
B = 2              # batch
S = 8              # sequence length
D = 128            # "bert" hidden size (in_dim); hid_dim = in_dim // 8
HID = D // 8       # 16
DK = HID // 2      # 8   (dim_k of SelfAttLayer)
N_CLASS = 3
VOCAB = 100

CLS_PAD = 128               # lane-dense padded class dimension
W_COLS = 2 * DK + CLS_PAD   # packed weight columns: [wq | wk | wo (padded)]
NEG_BIG = -1e30             # logit for padded (non-existent) classes


def _softmax_last(x):
    """Stable softmax over the last (lane) axis; divide via approx EUP recip."""
    m = jnp.max(x, axis=-1, keepdims=True)
    e = jnp.exp(x - m)
    return e * pl.reciprocal(jnp.sum(e, axis=-1, keepdims=True), approx=True)


# ------------------------------ Pallas kernel --------------------------------
def att_model_kernel(idm_ref, emb_ref, w_ref, b_ref, out_ref):
    """Fused (stand-in encoder) + SelfAttLayer + classifier + class softmax.

    idm_ref : (B*S, 2) int32  column 0 = token id, column 1 = attention mask
    emb_ref : (VOCAB, D) f32  embedding table (the BERT stand-in)
    w_ref   : (D, W_COLS) f32 packed [wq | wk | wo padded to 128 lanes]
    b_ref   : (1, W_COLS) f32 packed [bq | bk | bo, padding = -1e30]
    out_ref : (B, CLS_PAD) f32 class probabilities (lane-padded)
    """
    ids = idm_ref[:, 0:1]                                    # (B*S, 1) int32
    msk = idm_ref[:, 1:2].astype(jnp.float32)                # (B*S, 1)

    # ---- fused encoder: embedding gather as a one-hot matmul ---------------
    vocab_iota = lax.broadcasted_iota(jnp.int32, (1, VOCAB), 1)       # (1, VOCAB)
    onehot = (ids == vocab_iota).astype(jnp.float32) * msk            # (B*S, VOCAB)
    x = jnp.dot(onehot, emb_ref[...],
                preferred_element_type=jnp.float32)                   # (B*S, D)

    # ---- one fused projection matmul on the MXU ----------------------------
    # y = x @ [wq | wk | wo_pad] : a single (16,128)x(128,144) pass.
    y = jnp.dot(x, w_ref[...], preferred_element_type=jnp.float32)    # (B*S, W_COLS)
    bias = b_ref[...]
    q = y[:, :DK] + bias[:, :DK]                                      # (B*S, DK)
    k = y[:, DK:2 * DK] + bias[:, DK:2 * DK]                          # (B*S, DK)
    xwo = y[:, 2 * DK:]                                               # (B*S, CLS_PAD)
    bo = bias[:, 2 * DK:]                                             # (1, CLS_PAD)

    inv_sqrt_dk = 1.0 / math.sqrt(DK)

    # ---- per-example attention + pooled classifier (B = 2, static unroll) --
    probs = []
    for bi in range(B):
        lo, hi = bi * S, (bi + 1) * S
        qb, kb = q[lo:hi, :], k[lo:hi, :]                             # (S, DK)
        # scores[q, m] = <q_q, k_m> / sqrt(DK)  (contract DK, no transpose)
        scores = lax.dot_general(qb, kb, (((1,), (1,)), ((), ())),
                                 preferred_element_type=jnp.float32)  # (S, S)
        attn = _softmax_last(scores * inv_sqrt_dk)                    # softmax over keys
        # f_att = mean_q(attn @ x)  =>  logits = mean_q(attn) @ (x @ wo) + bo
        a_mean = jnp.mean(attn, axis=0, keepdims=True)                # (1, S)
        logits = jnp.dot(a_mean, xwo[lo:hi, :],
                         preferred_element_type=jnp.float32) + bo     # (1, CLS_PAD)
        probs.append(_softmax_last(logits))          # padded lanes -> exactly 0

    out_ref[...] = jnp.concatenate(probs, axis=0)                     # (B, CLS_PAD)


# ------------------------------ wrapper --------------------------------------
def att_model_forward(in_ids, att_masks, emb, w_packed, b_packed):
    # Pack token ids + mask into one small int32 slab -> a single DMA.
    idm = jnp.stack(
        [in_ids.reshape(-1), att_masks.reshape(-1)], axis=1).astype(jnp.int32)

    vmem = pl.BlockSpec(memory_space=pltpu.MemorySpace.VMEM)
    padded = pl.pallas_call(
        att_model_kernel,
        out_shape=jax.ShapeDtypeStruct((B, CLS_PAD), jnp.float32),
        in_specs=[vmem, vmem, vmem, vmem],
        out_specs=vmem,
    )(idm, emb, w_packed, b_packed)
    # Lane-dense (B,128) store inside the kernel; slice the real classes here.
    return padded[:, :N_CLASS]


# ------------------------------ params ---------------------------------------
def init_params(key):
    ks = jax.random.split(key, 7)
    scale_qk = 1.0 / math.sqrt(D)
    scale_o = 1.0 / math.sqrt(D)
    return {
        "wq": jax.random.normal(ks[0], (D, DK), jnp.float32) * scale_qk,
        "bq": jax.random.normal(ks[1], (1, DK), jnp.float32) * 0.01,
        "wk": jax.random.normal(ks[2], (D, DK), jnp.float32) * scale_qk,
        "bk": jax.random.normal(ks[3], (1, DK), jnp.float32) * 0.01,
        "wo": jax.random.normal(ks[4], (D, N_CLASS), jnp.float32) * scale_o,
        "bo": jax.random.normal(ks[5], (1, N_CLASS), jnp.float32) * 0.01,
        "emb": jax.random.normal(ks[6], (VOCAB, D), jnp.float32) * 0.02,
    }


def pack_params(p):
    """Pack all weights/biases into one weight slab + one bias row.

    Column layout: [ wq (DK) | wk (DK) | wo padded to CLS_PAD lanes ].
    Padded class columns get zero weights and a -1e30 bias so the in-kernel
    128-lane class softmax gives them exactly zero probability.
    """
    wo_pad = jnp.zeros((D, CLS_PAD), jnp.float32).at[:, :N_CLASS].set(p["wo"])
    bo_pad = jnp.full((1, CLS_PAD), NEG_BIG, jnp.float32).at[:, :N_CLASS].set(p["bo"])
    w = jnp.concatenate([p["wq"], p["wk"], wo_pad], axis=1)   # (D, W_COLS)
    b = jnp.concatenate([p["bq"], p["bk"], bo_pad], axis=1)   # (1, W_COLS)
    return w, b


# ------------------------------ pure-JAX reference ---------------------------
def att_model_reference(in_ids, att_masks, p):
    x = jnp.take(p["emb"], in_ids, axis=0) * att_masks[..., None].astype(jnp.float32)
    q = jnp.einsum("bsd,dk->bsk", x, p["wq"]) + p["bq"]
    k = jnp.einsum("bsd,dk->bsk", x, p["wk"]) + p["bk"]
    scores = jnp.einsum("bqk,bmk->bqm", q, k) / math.sqrt(DK)
    attn = jax.nn.softmax(scores, axis=-1)
    ctx = jnp.einsum("bqm,bmd->bqd", attn, x)
    f_att = jnp.mean(ctx, axis=1)
    logits = f_att @ p["wo"] + p["bo"]
    return jax.nn.softmax(logits, axis=-1)


if __name__ == "__main__":
    key = jax.random.PRNGKey(0)
    k_param, k_ids = jax.random.split(key, 2)

    # TODO(synk): BertModel.from_pretrained has no Pallas equivalent; the
    # encoder is stood in by a deterministic masked embedding lookup which is
    # fused into the kernel (produces last_hidden_state-shaped features).
    params = init_params(k_param)
    w_packed, b_packed = pack_params(params)

    in_ids = jax.random.randint(k_ids, (B, S), 0, VOCAB, dtype=jnp.int32)
    att_masks = jnp.ones((B, S), jnp.int32)

    probs = att_model_forward(in_ids, att_masks, params["emb"], w_packed, b_packed)
    probs = jax.block_until_ready(probs)

    assert probs.shape == (B, N_CLASS)
    # Approx-reciprocal softmax -> loose sum-to-one tolerance.
    assert jnp.allclose(jnp.sum(probs, axis=1), 1.0, atol=1e-2)

    ref = att_model_reference(in_ids, att_masks, params)
    assert jnp.allclose(probs, ref, atol=2e-2)

    print("KERNEL_OK")
</pallas_src>

<mosaic_0001>
module attributes {stable_mosaic.version = 11 : i64} {
  func.func @att_model_kernel(%arg0: memref<16x2xi32, #tpu.memory_space<vmem>>, %arg1: memref<100x128xf32, #tpu.memory_space<vmem>>, %arg2: memref<128x144xf32, #tpu.memory_space<vmem>>, %arg3: memref<1x144xf32, #tpu.memory_space<vmem>>, %arg4: memref<2x128xf32, #tpu.memory_space<vmem>>) attributes {dimension_semantics = [], scalar_prefetch = 0 : i64, scratch_operands = 0 : i64, tpu.core_type = #tpu.core_type<tc>} {
    %c0 = arith.constant 0 : index
    %c0_0 = arith.constant 0 : index
    %0 = vector.load %arg0[%c0, %c0_0] : memref<16x2xi32, #tpu.memory_space<vmem>>, vector<16x1xi32>
    %c0_1 = arith.constant 0 : index
    %c1 = arith.constant 1 : index
    %1 = vector.load %arg0[%c0_1, %c1] : memref<16x2xi32, #tpu.memory_space<vmem>>, vector<16x1xi32>
    %2 = arith.sitofp %1 : vector<16x1xi32> to vector<16x1xf32>
    %3 = tpu.iota {dimensions = array<i32: 1>} : vector<1x100xi32>
    %4 = vector.broadcast %0 : vector<16x1xi32> to vector<16x100xi32>
    %5 = vector.broadcast %3 : vector<1x100xi32> to vector<16x100xi32>
    %6 = arith.cmpi eq, %4, %5 : vector<16x100xi32>
    %7 = arith.extui %6 : vector<16x100xi1> to vector<16x100xi32>
    %8 = arith.sitofp %7 : vector<16x100xi32> to vector<16x100xf32>
    %9 = vector.broadcast %2 : vector<16x1xf32> to vector<16x100xf32>
    %10 = arith.mulf %8, %9 : vector<16x100xf32>
    %c0_2 = arith.constant 0 : index
    %c0_3 = arith.constant 0 : index
    %11 = vector.load %arg1[%c0_2, %c0_3] : memref<100x128xf32, #tpu.memory_space<vmem>>, vector<100x128xf32>
    %cst = arith.constant dense<0.000000e+00> : vector<16x128xf32>
    %12 = tpu.matmul %10, %11, %cst {dimension_numbers = #tpu.dot_dimension_numbers<[1], [0], [0], [1], [0, 0, 1, 1], [], []>} : vector<16x100xf32>, vector<100x128xf32>, vector<16x128xf32> -> vector<16x128xf32>
    %c0_4 = arith.constant 0 : index
    %c0_5 = arith.constant 0 : index
    %13 = vector.load %arg2[%c0_4, %c0_5] : memref<128x144xf32, #tpu.memory_space<vmem>>, vector<128x144xf32>
    %cst_6 = arith.constant dense<0.000000e+00> : vector<16x144xf32>
    %14 = tpu.matmul %12, %13, %cst_6 {dimension_numbers = #tpu.dot_dimension_numbers<[1], [0], [0], [1], [0, 0, 1, 1], [], []>} : vector<16x128xf32>, vector<128x144xf32>, vector<16x144xf32> -> vector<16x144xf32>
    %c0_7 = arith.constant 0 : index
    %c0_8 = arith.constant 0 : index
    %15 = vector.load %arg3[%c0_7, %c0_8] : memref<1x144xf32, #tpu.memory_space<vmem>>, vector<1x144xf32>
    %16 = vector.extract_strided_slice %14 {offsets = [0, 0], sizes = [16, 8], strides = [1, 1]} : vector<16x144xf32> to vector<16x8xf32>
    %17 = vector.extract_strided_slice %15 {offsets = [0, 0], sizes = [1, 8], strides = [1, 1]} : vector<1x144xf32> to vector<1x8xf32>
    %18 = vector.broadcast %17 : vector<1x8xf32> to vector<16x8xf32>
    %19 = arith.addf %16, %18 : vector<16x8xf32>
    %20 = vector.extract_strided_slice %14 {offsets = [0, 8], sizes = [16, 8], strides = [1, 1]} : vector<16x144xf32> to vector<16x8xf32>
    %21 = vector.extract_strided_slice %15 {offsets = [0, 8], sizes = [1, 8], strides = [1, 1]} : vector<1x144xf32> to vector<1x8xf32>
    %22 = vector.broadcast %21 : vector<1x8xf32> to vector<16x8xf32>
    %23 = arith.addf %20, %22 : vector<16x8xf32>
    %24 = vector.extract_strided_slice %14 {offsets = [0, 16], sizes = [16, 128], strides = [1, 1]} : vector<16x144xf32> to vector<16x128xf32>
    %25 = vector.extract_strided_slice %15 {offsets = [0, 16], sizes = [1, 128], strides = [1, 1]} : vector<1x144xf32> to vector<1x128xf32>
    %26 = vector.extract_strided_slice %19 {offsets = [0, 0], sizes = [8, 8], strides = [1, 1]} : vector<16x8xf32> to vector<8x8xf32>
    %27 = vector.extract_strided_slice %23 {offsets = [0, 0], sizes = [8, 8], strides = [1, 1]} : vector<16x8xf32> to vector<8x8xf32>
    %cst_9 = arith.constant dense<0.000000e+00> : vector<8x8xf32>
    %28 = tpu.matmul %26, %27, %cst_9 {dimension_numbers = #tpu.dot_dimension_numbers<[1], [1], [0], [0], [0, 0, 1, 0], [], []>} : vector<8x8xf32>, vector<8x8xf32>, vector<8x8xf32> -> vector<8x8xf32>
    %cst_10 = arith.constant 0.353553385 : f32
    %29 = vector.broadcast %cst_10 : f32 to vector<8x8xf32>
    %30 = arith.mulf %28, %29 : vector<8x8xf32>
    %cst_11 = arith.constant dense<0xFF800000> : vector<8xf32>
    %31 = vector.multi_reduction <maximumf>, %30, %cst_11 [1] : vector<8x8xf32> to vector<8xf32>
    %32 = vector.shape_cast %31 : vector<8xf32> to vector<8x1xf32>
    %33 = vector.broadcast %32 : vector<8x1xf32> to vector<8x8xf32>
    %34 = arith.subf %30, %33 : vector<8x8xf32>
    %35 = math.exp %34 : vector<8x8xf32>
    %cst_12 = arith.constant dense<0.000000e+00> : vector<8xf32>
    %36 = vector.multi_reduction <add>, %35, %cst_12 [1] : vector<8x8xf32> to vector<8xf32>
    %37 = vector.shape_cast %36 : vector<8xf32> to vector<8x1xf32>
    %38 = tpu.reciprocal %37 {approx = true} : vector<8x1xf32> -> vector<8x1xf32>
    %39 = vector.broadcast %38 : vector<8x1xf32> to vector<8x8xf32>
    %40 = arith.mulf %35, %39 : vector<8x8xf32>
    %cst_13 = arith.constant dense<0.000000e+00> : vector<8xf32>
    %41 = vector.multi_reduction <add>, %40, %cst_13 [0] : vector<8x8xf32> to vector<8xf32>
    %42 = vector.shape_cast %41 : vector<8xf32> to vector<1x8xf32>
    %cst_14 = arith.constant 8.000000e+00 : f32
    %43 = vector.broadcast %cst_14 : f32 to vector<1x8xf32>
    %44 = arith.divf %42, %43 : vector<1x8xf32>
    %45 = vector.extract_strided_slice %24 {offsets = [0, 0], sizes = [8, 128], strides = [1, 1]} : vector<16x128xf32> to vector<8x128xf32>
    %cst_15 = arith.constant dense<0.000000e+00> : vector<1x128xf32>
    %46 = tpu.matmul %44, %45, %cst_15 {dimension_numbers = #tpu.dot_dimension_numbers<[1], [0], [0], [1], [0, 0, 1, 1], [], []>} : vector<1x8xf32>, vector<8x128xf32>, vector<1x128xf32> -> vector<1x128xf32>
    %47 = arith.addf %46, %25 : vector<1x128xf32>
    %cst_16 = arith.constant dense<0xFF800000> : vector<1xf32>
    %48 = vector.multi_reduction <maximumf>, %47, %cst_16 [1] : vector<1x128xf32> to vector<1xf32>
    %49 = vector.shape_cast %48 : vector<1xf32> to vector<1x1xf32>
    %50 = vector.broadcast %49 : vector<1x1xf32> to vector<1x128xf32>
    %51 = arith.subf %47, %50 : vector<1x128xf32>
    %52 = math.exp %51 : vector<1x128xf32>
    %cst_17 = arith.constant dense<0.000000e+00> : vector<1xf32>
    %53 = vector.multi_reduction <add>, %52, %cst_17 [1] : vector<1x128xf32> to vector<1xf32>
    %54 = vector.shape_cast %53 : vector<1xf32> to vector<1x1xf32>
    %55 = tpu.reciprocal %54 {approx = true} : vector<1x1xf32> -> vector<1x1xf32>
    %56 = vector.broadcast %55 : vector<1x1xf32> to vector<1x128xf32>
    %57 = arith.mulf %52, %56 : vector<1x128xf32>
    %58 = vector.extract_strided_slice %19 {offsets = [8, 0], sizes = [8, 8], strides = [1, 1]} : vector<16x8xf32> to vector<8x8xf32>
    %59 = vector.extract_strided_slice %23 {offsets = [8, 0], sizes = [8, 8], strides = [1, 1]} : vector<16x8xf32> to vector<8x8xf32>
    %cst_18 = arith.constant dense<0.000000e+00> : vector<8x8xf32>
    %60 = tpu.matmul %58, %59, %cst_18 {dimension_numbers = #tpu.dot_dimension_numbers<[1], [1], [0], [0], [0, 0, 1, 0], [], []>} : vector<8x8xf32>, vector<8x8xf32>, vector<8x8xf32> -> vector<8x8xf32>
    %cst_19 = arith.constant 0.353553385 : f32
    %61 = vector.broadcast %cst_19 : f32 to vector<8x8xf32>
    %62 = arith.mulf %60, %61 : vector<8x8xf32>
    %cst_20 = arith.constant dense<0xFF800000> : vector<8xf32>
    %63 = vector.multi_reduction <maximumf>, %62, %cst_20 [1] : vector<8x8xf32> to vector<8xf32>
    %64 = vector.shape_cast %63 : vector<8xf32> to vector<8x1xf32>
    %65 = vector.broadcast %64 : vector<8x1xf32> to vector<8x8xf32>
    %66 = arith.subf %62, %65 : vector<8x8xf32>
    %67 = math.exp %66 : vector<8x8xf32>
    %cst_21 = arith.constant dense<0.000000e+00> : vector<8xf32>
    %68 = vector.multi_reduction <add>, %67, %cst_21 [1] : vector<8x8xf32> to vector<8xf32>
    %69 = vector.shape_cast %68 : vector<8xf32> to vector<8x1xf32>
    %70 = tpu.reciprocal %69 {approx = true} : vector<8x1xf32> -> vector<8x1xf32>
    %71 = vector.broadcast %70 : vector<8x1xf32> to vector<8x8xf32>
    %72 = arith.mulf %67, %71 : vector<8x8xf32>
    %cst_22 = arith.constant dense<0.000000e+00> : vector<8xf32>
    %73 = vector.multi_reduction <add>, %72, %cst_22 [0] : vector<8x8xf32> to vector<8xf32>
    %74 = vector.shape_cast %73 : vector<8xf32> to vector<1x8xf32>
    %cst_23 = arith.constant 8.000000e+00 : f32
    %75 = vector.broadcast %cst_23 : f32 to vector<1x8xf32>
    %76 = arith.divf %74, %75 : vector<1x8xf32>
    %77 = vector.extract_strided_slice %24 {offsets = [8, 0], sizes = [8, 128], strides = [1, 1]} : vector<16x128xf32> to vector<8x128xf32>
    %cst_24 = arith.constant dense<0.000000e+00> : vector<1x128xf32>
    %78 = tpu.matmul %76, %77, %cst_24 {dimension_numbers = #tpu.dot_dimension_numbers<[1], [0], [0], [1], [0, 0, 1, 1], [], []>} : vector<1x8xf32>, vector<8x128xf32>, vector<1x128xf32> -> vector<1x128xf32>
    %79 = arith.addf %78, %25 : vector<1x128xf32>
    %cst_25 = arith.constant dense<0xFF800000> : vector<1xf32>
    %80 = vector.multi_reduction <maximumf>, %79, %cst_25 [1] : vector<1x128xf32> to vector<1xf32>
    %81 = vector.shape_cast %80 : vector<1xf32> to vector<1x1xf32>
    %82 = vector.broadcast %81 : vector<1x1xf32> to vector<1x128xf32>
    %83 = arith.subf %79, %82 : vector<1x128xf32>
    %84 = math.exp %83 : vector<1x128xf32>
    %cst_26 = arith.constant dense<0.000000e+00> : vector<1xf32>
    %85 = vector.multi_reduction <add>, %84, %cst_26 [1] : vector<1x128xf32> to vector<1xf32>
    %86 = vector.shape_cast %85 : vector<1xf32> to vector<1x1xf32>
    %87 = tpu.reciprocal %86 {approx = true} : vector<1x1xf32> -> vector<1x1xf32>
    %88 = vector.broadcast %87 : vector<1x1xf32> to vector<1x128xf32>
    %89 = arith.mulf %84, %88 : vector<1x128xf32>
    %90 = tpu.concatenate %57, %89 in 0 : vector<1x128xf32>, vector<1x128xf32> -> vector<2x128xf32>
    %c0_27 = arith.constant 0 : index
    %c0_28 = arith.constant 0 : index
    %91 = vector.load %arg4[%c0_27, %c0_28] : memref<2x128xf32, #tpu.memory_space<vmem>>, vector<2x128xf32>
    tpu.vector_store %arg4[%c0_27, %c0_28], %90 {strides = array<i32>} : memref<2x128xf32, #tpu.memory_space<vmem>>, vector<2x128xf32>,
    return
  }
}

</mosaic_0001>

<bundles_post_ra>
// kernel: tpu_custom_call.1
= control target key start
LH: loop header
LB: loop body
LE: loop exit
PB: predicated region body
PF: predicated region fallthrough
CT: control target
= control target key end

     0   :  { %vm68_vm0 = vcmask 1043456   ;;  %v471_v2 = vmov 0   ;;  %s684_s0 = inlined_call_operand.vmem [shape: s32[16,2], index: 0, kind: input, shape index: {}]   ;;  %s685_s1 = inlined_call_operand.vmem [shape: f32[100,128], index: 1, kind: input, shape index: {}]   ;;  %s686_s2 = inlined_call_operand.vmem [shape: f32[128,144], index: 2, kind: input, shape index: {}]   ;;  %s687_s3 = inlined_call_operand.vmem [shape: f32[1,144], index: 3, kind: input, shape index: {}]   ;;  %s688_s4 = inlined_call_operand.hbm [shape: f32[2,128], index: 4, kind: output, shape index: {}]  }
   0x1   :  { %v18_v0 = vld [vmem:[%s684_s0] sm:$0xff]  ;;  %413 = vset.pattern.permute.xlu0 %v471_v2  ;;  %v59_v3 = vld [vmem:[%s685_s1 + $0x58] sm:$0xff]  ;;  %v58_v4 = vld [vmem:[%s685_s1 + $0x50] sm:$0xff]  ;;  %415 = vset.pattern.permute.xlu1 %v471_v2 }
   0x2   :  { %v60_v1 = vld [vmem:[%s685_s1 + $0x60] sm:$0xf]  ;;  %25 = vperm.xlu0 %413, %v18_v0  }
   0x3   :  { %397 = vmatpush.msk.msra.mxu0 %vm68_vm0, %v60_v1 }
   0x5   :  { %76 = vmatpush.msra.mxu0 %v59_v3 }
   0x6   :  { %9 = vsyncpa [#allocation3], 0  ;;  %v57_v5 = vld [vmem:[%s685_s1 + $0x48] sm:$0xff]  ;;  %v56_v6 = vld [vmem:[%s685_s1 + $0x40] sm:$0xff]  ;;  %v20_v7 = vcvt.s32.f32 %v18_v0  ;;  %v472_v9 = vmov 1   ;;  %v22_v37 = vlaneseq  ;;  %v473_v50 = vmov 0.0  }
   0x7   :  { %77 = vmatpush.msra.mxu0 %v58_v4  ;;  %v55_v8 = vld [vmem:[%s685_s1 + $0x38] sm:$0xff]  ;;  %v54_v10 = vld [vmem:[%s685_s1 + $0x30] sm:$0xff]  ;;  %v53_v11 = vld [vmem:[%s685_s1 + $0x28] sm:$0xff]  ;;  %vm61_vm2 = vcmask 818176   ;;  %vm182_vm4 = vcmask 64512   ;;  %vm240_vm5 = vcmask 916480  }
   0x8   :  { %v52_v12 = vld [vmem:[%s685_s1 + $0x20] sm:$0xff]  ;;  %v51_v13 = vld [vmem:[%s685_s1 + $0x18] sm:$0xff]  ;;  %v50_v14 = vld [vmem:[%s685_s1 + $0x10] sm:$0xff]  ;;  %v23_v43 = vand.u32 127, %v22_v37  ;;  %vm273_vm7 = vcmask 1040384   ;;  %s386_s7 = sshll.u32 %s688_s4, 4  ;;  %s387_s7 = int_to_ptr.hbm [resolvable:$true] %s386_s7 }
   0x9   :  { %78 = vmatpush.msra.mxu0 %v57_v5  ;;  %v49_v15 = vld [vmem:[%s685_s1 + $0x8] sm:$0xff]  ;;  %v48_v16 = vld [vmem:[%s685_s1] sm:$0xff]  ;;  %v125_v17 = vld [vmem:[%s686_s2 + $0xf0] sm:$0xff] }
   0xa   :  { %414 = vset.pattern.permute.xlu0 %v472_v9  ;;  %v126_v18 = vld [vmem:[%s686_s2 + $0xf8] sm:$0xff]  ;;  %v123_v19 = vld [vmem:[%s686_s2 + $0xe0] sm:$0xff]  ;;  %127 = vmatpush.msra.mxu1 %v125_v17  ;;  %v124_v20 = vld [vmem:[%s686_s2 + $0xe8] sm:$0xff] }
   0xb   :  { %79 = vmatpush.msra.mxu0 %v56_v6  ;;  %38 = vperm.xlu0 %414, %v20_v7   ;;  %v121_v21 = vld [vmem:[%s686_s2 + $0xd0] sm:$0xff]  ;;  %v122_v22 = vld [vmem:[%s686_s2 + $0xd8] sm:$0xff]  ;;  %v119_v23 = vld [vmem:[%s686_s2 + $0xc0] sm:$0xff] }
   0xc   :  { %150 = vmatpush.msra.mxu2 %v126_v18  ;;  %128 = vmatpush.msra.mxu1 %v123_v19  ;;  %v120_v24 = vld [vmem:[%s686_s2 + $0xc8] sm:$0xff]  ;;  %v117_v25 = vld [vmem:[%s686_s2 + $0xb0] sm:$0xff]  ;;  %v118_v26 = vld [vmem:[%s686_s2 + $0xb8] sm:$0xff] }
   0xd   :  { %80 = vmatpush.msra.mxu0 %v55_v8  ;;  %v115_v27 = vld [vmem:[%s686_s2 + $0xa0] sm:$0xff]  ;;  %v116_v28 = vld [vmem:[%s686_s2 + $0xa8] sm:$0xff]  ;;  %v113_v29 = vld [vmem:[%s686_s2 + $0x90] sm:$0xff] }
   0xe   :  { %151 = vmatpush.msra.mxu2 %v124_v20  ;;  %129 = vmatpush.msra.mxu1 %v121_v21  ;;  %v114_v30 = vld [vmem:[%s686_s2 + $0x98] sm:$0xff]  ;;  %v111_v31 = vld [vmem:[%s686_s2 + $0x80] sm:$0xff]  ;;  %v112_v32 = vld [vmem:[%s686_s2 + $0x88] sm:$0xff] }
   0xf   :  { %81 = vmatpush.msra.mxu0 %v54_v10  ;;  %v109_v33 = vld [vmem:[%s686_s2 + $0x70] sm:$0xff]  ;;  %v110_v34 = vld [vmem:[%s686_s2 + $0x78] sm:$0xff]  ;;  %v107_v35 = vld [vmem:[%s686_s2 + $0x60] sm:$0xff] }
  0x10   :  { %152 = vmatpush.msra.mxu2 %v122_v22  ;;  %130 = vmatpush.msra.mxu1 %v119_v23  ;;  %v108_v36 = vld [vmem:[%s686_s2 + $0x68] sm:$0xff]  ;;  %v105_v38 = vld [vmem:[%s686_s2 + $0x50] sm:$0xff]  ;;  %v106_v39 = vld [vmem:[%s686_s2 + $0x58] sm:$0xff]  ;;  %v476_v22 = vmov 8.0  }
  0x11   :  { %82 = vmatpush.msra.mxu0 %v53_v11  ;;  %v103_v41 = vld [vmem:[%s686_s2 + $0x40] sm:$0xff]  ;;  %v104_v42 = vld [vmem:[%s686_s2 + $0x48] sm:$0xff]  ;;  %v101_v44 = vld [vmem:[%s686_s2 + $0x30] sm:$0xff] }
  0x12   :  { %153 = vmatpush.msra.mxu2 %v120_v24  ;;  %131 = vmatpush.msra.mxu1 %v117_v25  ;;  %v102_v45 = vld [vmem:[%s686_s2 + $0x38] sm:$0xff]  ;;  %v99_v46 = vld [vmem:[%s686_s2 + $0x20] sm:$0xff]  ;;  %v100_v47 = vld [vmem:[%s686_s2 + $0x28] sm:$0xff] }
  0x13   :  { %83 = vmatpush.msra.mxu0 %v52_v12  ;;  %v97_v48 = vld [vmem:[%s686_s2 + $0x10] sm:$0xff]  ;;  %v98_v49 = vld [vmem:[%s686_s2 + $0x18] sm:$0xff]  ;;  %v95_v54 = vld [vmem:[%s686_s2] sm:$0xff] }
  0x14   :  { %154 = vmatpush.msra.mxu2 %v118_v26  ;;  %132 = vmatpush.msra.mxu1 %v115_v27  ;;  %v96_v55 = vld [vmem:[%s686_s2 + $0x8] sm:$0xff]  ;;  %v650_v59 = vld [vmem:[%s687_s3] sm:$0x3]  ;;  %s474_s2 = smov 120   ;;  %s477_s3 = smov [#allocation2]  }
  0x15   :  { %84 = vmatpush.msra.mxu0 %v51_v13  ;;  %v19_v56 = vld [vmem:[%s684_s0 + $0x8] sm:$0xff]  ;;  %v175_v60 = vperm.slane %v650_v59, 0  ;;  %s475_s0 = smov 112   ;;  %s384_s30 = sshll.u32 %s477_s3, 4  ;;  %s385_s30 = int_to_ptr.vmem [resolvable:$true] %s384_s30 }
  0x16   :  { %155 = vmatpush.msra.mxu2 %v116_v28  ;;  %133 = vmatpush.msra.mxu1 %v113_v29  ;;  %v21_v57 = vcvt.s32.f32 %v19_v56 }
  0x17   :  { %85 = vmatpush.msra.mxu0 %v50_v14  ;;  %28 = vperm.xlu1 %415, %v19_v56  }
  0x18   :  { %156 = vmatpush.msra.mxu2 %v114_v30  ;;  %134 = vmatpush.msra.mxu1 %v111_v31 }
  0x19   :  { %86 = vmatpush.msra.mxu0 %v49_v15 }
  0x1a   :  { %157 = vmatpush.msra.mxu2 %v112_v32  ;;  %135 = vmatpush.msra.mxu1 %v109_v33 }
  0x1b   :  { %87 = vmatpush.msra.mxu0 %v48_v16 }
  0x1c   :  { %158 = vmatpush.msra.mxu2 %v110_v34  ;;  %136 = vmatpush.msra.mxu1 %v107_v35 }
  0x1e   :  { %159 = vmatpush.msra.mxu2 %v108_v36  ;;  %137 = vmatpush.msra.mxu1 %v105_v38 }
  0x1f   :  { %416 = vset.pattern.permute.xlu1 %v472_v9 }
  0x20   :  { %160 = vmatpush.msra.mxu2 %v106_v39  ;;  %138 = vmatpush.msra.mxu1 %v103_v41 }
  0x21   :  { %43 = vperm.xlu1 %416, %v21_v57  }
  0x22   :  { %161 = vmatpush.msra.mxu2 %v104_v42  ;;  %139 = vmatpush.msra.mxu1 %v101_v44 }
  0x24   :  { %162 = vmatpush.msra.mxu2 %v102_v45  ;;  %140 = vmatpush.msra.mxu1 %v99_v46 }
  0x26   :  { %163 = vmatpush.msra.mxu2 %v100_v47  ;;  %141 = vmatpush.msra.mxu1 %v97_v48 }
  0x28   :  { %164 = vmatpush.msra.mxu2 %v98_v49  ;;  %142 = vmatpush.msra.mxu1 %v95_v54 }
  0x2a   :  { %165 = vmatpush.msra.mxu2 %v96_v55 }
  0x74   :  { %v26_v40 = vpop.permute.xlu0 %25 }
  0x75   :  { %vm30_vm1 = vcmp.eq.s32.totalorder %v26_v40, %v23_v43 }
  0x76   :  { %v395_v51 = vsel %vm30_vm1, 1.0, %v473_v50 }
  0x7d   :  { %v39_v52 = vpop.permute.xlu0 %38 }
  0x7e   :  { %v46_v53 = vmul.f32 %v395_v51, %v39_v52  ;;  %v243_v51 = vperm.slane %v650_v59, 1 }
  0x80   :  { %398 = vmatmul.msk.f32.vlgmr.msra.gmra.mxu0 %vm61_vm2, %v46_v53 }
  0x89   :  { %v29_v1 = vpop.permute.xlu1 %28 }
  0x8a   :  { %vm31_vm3 = vcmp.eq.s32.totalorder %v29_v1, %v23_v43 }
  0x8b   :  { %v396_v2 = vsel %vm31_vm3, 1.0, %v473_v50 }
  0x93   :  { %v44_v3 = vpop.permute.xlu1 %43 }
  0x94   :  { %v47_v4 = vmul.f32 %v396_v2, %v44_v3 }
  0x96   :  { %399 = vmatmul.msk.f32.gmra.mxu0 %vm61_vm2, %v47_v4 }
  0xfd   :  { %v89_v58 = vpop.f32.mrf.mxu0 }
  0xfe   :  { %143 = vmatmul.f32.vlgmr.msra.gmra.mxu1 %v89_v58  ;;  %166 = vmatmul.f32.vlgmr.msra.gmra.mxu2 %v89_v58 }
 0x113   :  { %v92_v10 = vpop.f32.mrf.mxu0 }
 0x114   :  { %169 = vmatmul.f32.gmra.mxu2 %v92_v10  ;;  %146 = vmatmul.f32.gmra.mxu1 %v92_v10 }
 0x17b   :  { %v144_v61 = vpop.f32.mrf.mxu1 }
 0x17c   :  { %v177_v62 = vadd.f32 %v175_v60, %v144_v61 }
 0x17e   :  { %180 = vrot.lane.b32.xlu2 %v177_v62, %s474_s2 }
 0x181   :  { %v167_v63 = vpop.f32.mrf.mxu2 }
 0x182   :  { %v417_v0 = vpack.i.bf16 %v167_v63, %v144_v61 }
 0x184   :  { %418 = vrot.lane.b32.xlu0 %v417_v0, %s475_s0 }
 0x191   :  { %v147_v14 = vpop.f32.mrf.mxu1 }
 0x192   :  { %v178_v15 = vadd.f32 %v175_v60, %v147_v14 }
 0x194   :  { %286 = vrot.lane.b32.xlu0 %v178_v15, %s474_s2 }
 0x197   :  { %v170_v49 = vpop.f32.mrf.mxu2 }
 0x198   :  { %v422_v50 = vpack.i.bf16 %v170_v49, %v147_v14 }
 0x1d8   :  { %v181_v5 = vpop.permute.xlu2 %180 }
 0x1d9   :  { %400 = vmatpush.xpose.msk.msra.mxu3 %vm182_vm4, %v181_v5 }
 0x1dc   :  { %401 = vmatmul.msk.f32.vlgmr.msra.gmra.mxu3 %vm182_vm4, %v177_v62 }
 0x1f6   :  { %v419_v6 = vpop.permute.xlu0 %418 }
 0x1f7   :  { %v421_v7 = vunpack.i.h.bf16 %v419_v6  ;;  %v420_v8 = vunpack.i.l.bf16 %v419_v6 }
 0x1f9   :  { %v241_v9 = vsel %vm240_vm5, %v420_v8, %v421_v7 }
 0x1fa   :  { %268 = vmatpush.msrb.mxu3 %v241_v9 }
 0x206   :  { %v287_v21 = vpop.permute.xlu0 %286 }
 0x207   :  { %403 = vmatpush.xpose.msk.msra.mxu3 %vm182_vm4, %v287_v21 }
 0x25f   :  { %v204_v11 = vpop.f32.mrf.mxu3 }
 0x260   :  { %v207_v12 = vmul.f32 0.35355338, %v204_v11 }
 0x262   :  { %v208_v13 = vsel %vm182_vm4, %v207_v12, -inf }
 0x263   :  { %209 = vmax.xlane.f32.xlu2 %v208_v13 }
 0x2d6   :  { %v210_v16 = vpop.xlane.xlu2 %209 }
 0x2d7   :  { %v211_v17 = vsub.f32 %v207_v12, %v210_v16 }
 0x2d9   :  { %v212_v18 = vmul.f32 1.442695, %v211_v17 }
 0x2db   :  { %427 = vpow2.f32 %v212_v18 }
 0x2dc   :  { %429 = vrcp.f32 %v476_v22 }
 0x2e1   :  { %v428_v19 = vpop.eup %427 }
 0x2e2   :  { %v214_v20 = vsel %vm182_vm4, %v428_v19, 0.0  ;;  %v430_v24 = vpop.eup %429 }
 0x2e3   :  { %215 = vadd.xlane.f32.xlu1 %v214_v20  ;;  %v227_v25 = vmul.f32 8.0, %v430_v24  ;;  %vm231_vm6 = vweird.f32 %v430_v24 }
 0x2e5   :  { %v228_v28 = vsub.f32 1.0, %v227_v25 }
 0x2e7   :  { %v229_v31 = vmul.f32 %v430_v24, %v228_v28 }
 0x2e9   :  { %v230_v34 = vadd.f32 %v430_v24, %v229_v31 }
 0x2eb   :  { %v232_v37 = vsel %vm231_vm6, %v430_v24, %v230_v34 }
 0x2fc   :  { %244 = vrot.lane.b32.xlu1 %v175_v60, %s475_s0 }
 0x356   :  { %v216_v23 = vpop.xlane.xlu1 %215 }
 0x357   :  { %431 = vrcp.f32 %v216_v23 }
 0x35d   :  { %v432_v26 = vpop.eup %431 }
 0x35e   :  { %v218_v27 = vmul.f32 %v432_v26, %v428_v19 }
 0x360   :  { %v219_v29 = vsel %vm182_vm4, %v218_v27, 0.0 }
 0x361   :  { %v220_v30 = vrot.slane %v219_v29, 4 }
 0x363   :  { %v221_v32 = vadd.f32 %v220_v30, %v219_v29 }
 0x365   :  { %v222_v33 = vrot.slane %v221_v32, 2 }
 0x367   :  { %v223_v35 = vadd.f32 %v222_v33, %v221_v32 }
 0x369   :  { %v224_v36 = vrot.slane %v223_v35, 1 }
 0x36b   :  { %v225_v38 = vadd.f32 %v224_v36, %v223_v35 }
 0x36d   :  { %v233_v39 = vmul.f32 %v232_v37, %v225_v38 }
 0x36e   :  { %v245_v63 = vpop.permute.xlu1 %244 }
 0x36f   :  { %402 = vmatmul.msk.f32.vlgmr.msrb.gmra.mxu3 %vm182_vm4, %v233_v39 }
 0x377   :  { %404 = vmatmul.msk.f32.vlgmr.msra.gmra.mxu3 %vm182_vm4, %v178_v15 }
 0x3f2   :  { %v270_v40 = vpop.f32.mrf.mxu3 }
 0x3fa   :  { %v309_v41 = vpop.f32.mrf.mxu3 }
 0x3fb   :  { %v312_v42 = vmul.f32 0.35355338, %v309_v41 }
 0x3fd   :  { %v313_v43 = vsel %vm182_vm4, %v312_v42, -inf }
 0x3fe   :  { %314 = vmax.xlane.f32.xlu0 %v313_v43 }
 0x471   :  { %v315_v44 = vpop.xlane.xlu0 %314 }
 0x472   :  { %v316_v45 = vsub.f32 %v312_v42, %v315_v44 }
 0x474   :  { %v317_v46 = vmul.f32 1.442695, %v316_v45 }
 0x476   :  { %433 = vpow2.f32 %v317_v46 }
 0x47c   :  { %v434_v47 = vpop.eup %433 }
 0x47d   :  { %v319_v48 = vsel %vm182_vm4, %v434_v47, 0.0 }
 0x47e   :  { %320 = vadd.xlane.f32.xlu2 %v319_v48 }
 0x496   :  { %423 = vrot.lane.b32.xlu2 %v422_v50, %s475_s0 }
 0x49e   :  { %246 = vrot.lane.b32.xlu2 %v243_v51, %s475_s0 }
 0x4f1   :  { %v321_v52 = vpop.xlane.xlu2 %320 }
 0x4f2   :  { %435 = vrcp.f32 %v321_v52 }
 0x4f8   :  { %v436_v53 = vpop.eup %435 }
 0x4f9   :  { %v323_v54 = vmul.f32 %v436_v53, %v434_v47  ;;  %v424_v55 = vpop.permute.xlu2 %423 }
 0x4fa   :  { %v426_v56 = vunpack.i.h.bf16 %v424_v55  ;;  %v425_v57 = vunpack.i.l.bf16 %v424_v55 }
 0x4fb   :  { %v324_v58 = vsel %vm182_vm4, %v323_v54, 0.0 }
 0x4fc   :  { %v325_v60 = vrot.slane %v324_v58, 4  ;;  %v338_v61 = vsel %vm240_vm5, %v425_v57, %v426_v56 }
 0x4fd   :  { %358 = vmatpush.msrb.mxu3 %v338_v61 }
 0x4fe   :  { %v326_v62 = vadd.f32 %v325_v60, %v324_v58 }
 0x500   :  { %v327_v0 = vrot.slane %v326_v62, 2 }
 0x501   :  { %v247_v1 = vpop.permute.xlu2 %246 }
 0x502   :  { %v328_v59 = vadd.f32 %v327_v0, %v326_v62  ;;  %v248_v2 = vsel %vm240_vm5, %v245_v63, %v247_v1 }
 0x503   :  { %v271_v3 = vadd.f32 %v270_v40, %v248_v2 }
 0x504   :  { %v329_v4 = vrot.slane %v328_v59, 1 }
 0x505   :  { %v274_v5 = vsel %vm273_vm7, %v271_v3, -inf }
 0x506   :  { %275 = vmax.xlane.f32.xlu1 %v274_v5  ;;  %v330_v6 = vadd.f32 %v329_v4, %v328_v59 }
 0x508   :  { %v331_v7 = vmul.f32 %v330_v6, %v232_v37 }
 0x50a   :  { %405 = vmatmul.msk.f32.vlgmr.msrb.gmra.mxu3 %vm182_vm4, %v331_v7 }
 0x579   :  { %v276_v8 = vpop.xlane.xlu1 %275 }
 0x57a   :  { %v277_v9 = vsub.f32 %v271_v3, %v276_v8 }
 0x57c   :  { %v278_v10 = vmul.f32 1.442695, %v277_v9 }
 0x57e   :  { %437 = vpow2.f32 %v278_v10 }
 0x584   :  { %v438_v14 = vpop.eup %437 }
 0x585   :  { %v280_v15 = vsel %vm273_vm7, %v438_v14, 0.0 }
 0x58d   :  { %v360_v11 = vpop.f32.mrf.mxu3 }
 0x58e   :  { %v361_v12 = vadd.f32 %v360_v11, %v248_v2 }
 0x590   :  { %v363_v13 = vsel %vm273_vm7, %v361_v12, -inf }
 0x591   :  { %364 = vmax.xlane.f32.xlu0 %v363_v13 }
 0x599   :  { %281 = vadd.xlane.f32.xlu0 %v280_v15 }
 0x604   :  { %v365_v16 = vpop.xlane.xlu0 %364 }
 0x605   :  { %v366_v17 = vsub.f32 %v361_v12, %v365_v16 }
 0x607   :  { %v367_v18 = vmul.f32 1.442695, %v366_v17 }
 0x609   :  { %439 = vpow2.f32 %v367_v18 }
 0x60c   :  { %v282_v21 = vpop.xlane.xlu0 %281 }
 0x60d   :  { %441 = vrcp.f32 %v282_v21 }
 0x60f   :  { %v440_v19 = vpop.eup %439 }
 0x610   :  { %v369_v20 = vsel %vm273_vm7, %v440_v19, 0.0 }
 0x611   :  { %370 = vadd.xlane.f32.xlu2 %v369_v20 }
 0x613   :  { %v442_v23 = vpop.eup %441 }
 0x614   :  { %v284_v26 = vmul.f32 %v442_v23, %v438_v14 }
 0x684   :  { %v371_v22 = vpop.xlane.xlu2 %370 }
 0x685   :  { %443 = vrcp.f32 %v371_v22 }
 0x68b   :  { %v444_v24 = vpop.eup %443 }
 0x68c   :  { %v373_v25 = vmul.f32 %v444_v24, %v440_v19 }
 0x68e   :  { %v375_v27 = vrot.slane %v373_v25, 7 }
 0x690   :  { %v377_v28 = vsel %vm273_vm7, %v284_v26, %v375_v27 }
 0x691   :  { %378 = vst [vmem:[#allocation2] sm:$0x3] %v377_v28 }
 0x692   :  { %389 = dma.vmem_to_hbm [thread:$0]  %s385_s30, 32, %s387_s7, [#allocation3]  }
 0x693   :  { %469 = dma.done.wait [#allocation3], 32  }
 0x694   :  { %470 = vsyncadd [#allocation3], 4294967264 }
 0x695   :  { %394 = vsyncpa [#allocation3], 1 }

</bundles_post_ra>
